<compile_context>
chip_gen: v6e
topology: v6e:2x2x1
jax: 0.10.0
libtpu: 0.0.40
codegen_flags: <defaults>
</compile_context>

<pallas_src>
import jax
import jax.numpy as jnp
from jax.experimental import pallas as pl
from jax.experimental.pallas import tpu as pltpu

BN_EPS = 1e-5
LANES = 128


def _round_up(x, m):
    return ((x + m - 1) // m) * m


# ---------------------------------------------------------------------------
# Kernels
# ---------------------------------------------------------------------------
def head_kernel_folded(x_ref, w_ref, b_ref, out_ref):
    # dropout(p=0.8) == identity at inference; BN (and, for small C, the logits
    # layer) already folded into (w, b). bf16 in, f32 accumulation.
    out_ref[...] = jnp.dot(x_ref[...], w_ref[...],
                           preferred_element_type=jnp.float32) + b_ref[...]


def head_kernel_two_matmul(x_ref, w1_ref, shift_ref, w2_ref, b2_ref, out_ref):
    # Large-CLASSES path: BN folded into W1 only; two MXU passes per tile.
    h = jnp.dot(x_ref[...], w1_ref[...],
                preferred_element_type=jnp.float32) + shift_ref[...]
    out_ref[...] = jnp.dot(h.astype(w2_ref.dtype), w2_ref[...],
                           preferred_element_type=jnp.float32) + b2_ref[...]


# ---------------------------------------------------------------------------
# One-time parameter folding (host/trace side; cached alongside the weights)
# ---------------------------------------------------------------------------
def fold_head_params(w1, gamma, beta, run_mean, run_var, w2=None, b2=None, *,
                     classify=True, weight_dtype=jnp.bfloat16, mode=None):
    """Fold Linear(no-bias) + BN(eval) [+ Linear(bias)] into kernel-ready params.

    w1: (Fin, H) pre-transposed, w2: (H, C) pre-transposed, b2: (C,).
    Class/embedding dim is padded to a multiple of 128 for lane-dense stores.
    """
    f32 = jnp.float32
    w1 = w1.astype(f32)
    scale = gamma.astype(f32) * jax.lax.rsqrt(run_var.astype(f32) + BN_EPS)
    shift = beta.astype(f32) - run_mean.astype(f32) * scale
    w1s = w1 * scale[None, :]                       # BN folded into first linear
    fin, hid = w1s.shape

    if not classify:
        h_pad = _round_up(hid, LANES)
        w = jnp.pad(w1s, ((0, 0), (0, h_pad - hid)))
        b = jnp.pad(shift, (0, h_pad - hid))
        return dict(mode="folded", classes=hid,
                    w=w.astype(weight_dtype), b=b.reshape(1, -1).astype(f32))

    classes = w2.shape[1]
    c_pad = _round_up(classes, LANES)
    w2p = jnp.pad(w2.astype(f32), ((0, 0), (0, c_pad - classes)))
    b2p = jnp.pad(b2.astype(f32), (0, c_pad - classes))

    if mode is None:
        # HBM weight bytes: folded = Fin*C_pad ; two-matmul = Fin*H + H*C_pad.
        mode = "folded" if fin * c_pad <= hid * (fin + c_pad) else "two_matmul"

    if mode == "folded":
        w_eff = w1s @ w2p                           # (Fin, C_pad)
        b_eff = shift @ w2p + b2p                   # (C_pad,)
        return dict(mode="folded", classes=classes,
                    w=w_eff.astype(weight_dtype),
                    b=b_eff.reshape(1, -1).astype(f32))

    return dict(mode="two_matmul", classes=classes,
                w1=w1s.astype(weight_dtype),
                shift=shift.reshape(1, -1).astype(f32),
                w2=w2p.astype(weight_dtype),
                b2=b2p.reshape(1, -1).astype(f32))


# ---------------------------------------------------------------------------
# pallas_call wrapper
# ---------------------------------------------------------------------------
def _resident_spec(shape, single_buffered):
    # Constant index_map -> block resident across the whole grid.
    if single_buffered:
        return pl.BlockSpec(shape, lambda i: (0,) * len(shape),
                            pipeline_mode=pl.Buffered(1))
    return pl.BlockSpec(shape, lambda i: (0,) * len(shape))


def _head_call(feats, params, bt, grid, single_buffer_weights):
    b_pad, fin = feats.shape
    if params["mode"] == "folded":
        kernel = head_kernel_folded
        weights = (params["w"], params["b"])
    else:
        kernel = head_kernel_two_matmul
        weights = (params["w1"], params["shift"], params["w2"], params["b2"])
    c_pad = weights[-1].shape[-1]

    in_specs = [pl.BlockSpec((bt, fin), lambda i: (i, 0))]          # feature tile
    in_specs += [_resident_spec(w.shape, single_buffer_weights) for w in weights]

    return pl.pallas_call(
        kernel,
        out_shape=jax.ShapeDtypeStruct((b_pad, c_pad), jnp.float32),
        grid=grid,
        in_specs=in_specs,
        out_specs=pl.BlockSpec((bt, c_pad), lambda i: (i, 0)),
        compiler_params=pltpu.CompilerParams(
            # Batch axis is independent -> "parallel" (splits across v7x's two
            # TensorCores whenever grid >= 2; no-op on v5e/v6e).
            dimension_semantics=("parallel",),
            # Explicit scoped-VMEM budget: above v5e's 16 MiB default, well
            # within v7x's 64 MiB physical VMEM per TensorCore.
            vmem_limit_bytes=32 * 1024 * 1024),
    )(feats, *weights)


def myresnet_head(feats, params, *, block_b=512):
    """Fused MyResnet head (eval). feats: (B, Fin) pooled backbone features."""
    if feats.dtype != jnp.bfloat16:
        # Backbone should emit bf16 pooled features; cast here otherwise.
        feats = feats.astype(jnp.bfloat16)
    b, _ = feats.shape
    classes = params["classes"]

    # Fixed batch block + cdiv-style grid: pad B to a multiple of the block so
    # large non-multiple batches never collapse to a single huge block.
    bt = block_b if b > block_b else _round_up(b, 8)
    b_pad = _round_up(b, bt)
    if b_pad != b:
        feats = jnp.pad(feats, ((0, b_pad - b), (0, 0)))
    grid = (b_pad // bt,)

    try:
        out = _head_call(feats, params, bt, grid, single_buffer_weights=True)
    except Exception:
        # Fallback for JAX builds without BlockSpec pipeline_mode / Buffered(1).
        out = _head_call(feats, params, bt, grid, single_buffer_weights=False)
    return out[:b, :classes]


# ---------------------------------------------------------------------------
if __name__ == "__main__":
    # Small, module-consistent shapes: resnet50 backbone -> 2048 pooled features.
    B, FIN, H, CLASSES = 8, 2048, 512, 128

    key = jax.random.PRNGKey(0)
    kx, kw1, kg, kb, kw2, kb2 = jax.random.split(key, 6)

    # Backbone pooled-feature output (stands in for self.model(x).view(B, -1));
    # backbone emits bf16 features.
    x = jax.random.normal(kx, (B, FIN), dtype=jnp.float32)
    x_bf16 = x.astype(jnp.bfloat16)

    w1 = jax.random.normal(kw1, (FIN, H), dtype=jnp.float32) * 0.02        # Linear(2048,512,bias=False)
    gamma = 1.0 + 0.01 * jax.random.normal(kg, (H,), dtype=jnp.float32)    # BatchNorm1d(512)
    beta = 0.01 * jax.random.normal(kb, (H,), dtype=jnp.float32)
    run_mean = jnp.zeros((H,), dtype=jnp.float32)
    run_var = jnp.ones((H,), dtype=jnp.float32)
    w2 = jax.random.normal(kw2, (H, CLASSES), dtype=jnp.float32) * 0.05    # logits Linear(512, CLASSES)
    b2 = 0.01 * jax.random.normal(kb2, (CLASSES,), dtype=jnp.float32)      # logits bias (PyTorch default)

    # f32 eval-mode reference of the original module.
    h_ref = x @ w1
    h_ref = (h_ref - run_mean) * jax.lax.rsqrt(run_var + BN_EPS) * gamma + beta
    logits_ref = h_ref @ w2 + b2

    # ---- classify=True, small-C -> fully folded single-matmul path ----------
    params = fold_head_params(w1, gamma, beta, run_mean, run_var, w2, b2,
                              classify=True)
    assert params["mode"] == "folded"
    out = jax.block_until_ready(myresnet_head(x_bf16, params))
    assert out.shape == (B, CLASSES)
    assert jnp.allclose(out, logits_ref, atol=6e-2, rtol=6e-2), \
        float(jnp.max(jnp.abs(out - logits_ref)))
    # Tight check of the kernel itself (exact folded bf16 math).
    ref_bf16 = (x_bf16.astype(jnp.float32) @ params["w"].astype(jnp.float32)
                + params["b"])[:, :CLASSES]
    assert jnp.allclose(out, ref_bf16, atol=1e-2, rtol=1e-2), \
        float(jnp.max(jnp.abs(out - ref_bf16)))

    # ---- classify=True, large-C two-matmul path (forced) with a non-128-
    #      aligned class count to exercise class padding ----------------------
    C2 = 100
    params2 = fold_head_params(w1, gamma, beta, run_mean, run_var,
                               w2[:, :C2], b2[:C2],
                               classify=True, mode="two_matmul")
    out2 = jax.block_until_ready(myresnet_head(x_bf16, params2))
    assert out2.shape == (B, C2)
    assert jnp.allclose(out2, logits_ref[:, :C2], atol=6e-2, rtol=6e-2), \
        float(jnp.max(jnp.abs(out2 - logits_ref[:, :C2])))

    # ---- classify=False embedding path; also exercises a ragged multi-block
    #      batch (B=20 with 8-row blocks -> padded to 24, grid=(3,)) ----------
    B3 = 20
    x3 = jax.random.normal(jax.random.PRNGKey(1), (B3, FIN), dtype=jnp.float32)
    params3 = fold_head_params(w1, gamma, beta, run_mean, run_var, classify=False)
    out3 = jax.block_until_ready(
        myresnet_head(x3.astype(jnp.bfloat16), params3, block_b=8))
    h3_ref = ((x3 @ w1) - run_mean) * jax.lax.rsqrt(run_var + BN_EPS) * gamma + beta
    assert out3.shape == (B3, H)
    assert jnp.allclose(out3, h3_ref, atol=6e-2, rtol=6e-2), \
        float(jnp.max(jnp.abs(out3 - h3_ref)))

    print("KERNEL_OK")
</pallas_src>

<mosaic_0001>
module attributes {stable_mosaic.version = 11 : i64} {
  func.func @head_kernel_folded(%arg0: i32, %arg1: memref<8x2048xbf16, #tpu.memory_space<vmem>>, %arg2: memref<2048x128xbf16, #tpu.memory_space<vmem>>, %arg3: memref<1x128xf32, #tpu.memory_space<vmem>>, %arg4: memref<8x128xf32, #tpu.memory_space<vmem>>) attributes {dimension_semantics = [#tpu.dimension_semantics<parallel>], iteration_bounds = array<i64: 1>, scalar_prefetch = 0 : i64, scratch_operands = 0 : i64, tpu.core_type = #tpu.core_type<tc>, window_params = [{transform_indices = @transform_0, window_bounds = array<i64: 8, 2048>}, {pipeline_mode = #tpu.pipeline_mode<synchronous>, transform_indices = @transform_1, window_bounds = array<i64: 2048, 128>}, {pipeline_mode = #tpu.pipeline_mode<synchronous>, transform_indices = @transform_2, window_bounds = array<i64: 1, 128>}, {transform_indices = @transform_3, window_bounds = array<i64: 8, 128>}]} {
    %c0 = arith.constant 0 : index
    %c0_0 = arith.constant 0 : index
    %0 = vector.load %arg1[%c0, %c0_0] : memref<8x2048xbf16, #tpu.memory_space<vmem>>, vector<8x2048xbf16>
    %c0_1 = arith.constant 0 : index
    %c0_2 = arith.constant 0 : index
    %1 = vector.load %arg2[%c0_1, %c0_2] : memref<2048x128xbf16, #tpu.memory_space<vmem>>, vector<2048x128xbf16>
    %cst = arith.constant dense<0.000000e+00> : vector<8x128xf32>
    %2 = tpu.matmul %0, %1, %cst {dimension_numbers = #tpu.dot_dimension_numbers<[1], [0], [0], [1], [0, 0, 1, 1], [], []>} : vector<8x2048xbf16>, vector<2048x128xbf16>, vector<8x128xf32> -> vector<8x128xf32>
    %c0_3 = arith.constant 0 : index
    %c0_4 = arith.constant 0 : index
    %3 = vector.load %arg3[%c0_3, %c0_4] : memref<1x128xf32, #tpu.memory_space<vmem>>, vector<1x128xf32>
    %4 = vector.broadcast %3 : vector<1x128xf32> to vector<8x128xf32>
    %5 = arith.addf %2, %4 : vector<8x128xf32>
    %c0_5 = arith.constant 0 : index
    %c0_6 = arith.constant 0 : index
    %6 = vector.load %arg4[%c0_5, %c0_6] : memref<8x128xf32, #tpu.memory_space<vmem>>, vector<8x128xf32>
    tpu.vector_store %arg4[%c0_5, %c0_6], %5 {strides = array<i32>} : memref<8x128xf32, #tpu.memory_space<vmem>>, vector<8x128xf32>,
    return
  }
  func.func @transform_0(%arg0: i32) -> (i32, i32) {
    %c0_i32 = arith.constant 0 : i32
    %c0_i32_0 = arith.constant 0 : i32
    return %arg0, %c0_i32 : i32, i32
  }
  func.func @transform_1(%arg0: i32) -> (i32, i32) {
    %c0_i32 = arith.constant 0 : i32
    %c0_i32_0 = arith.constant 0 : i32
    %c0_i32_1 = arith.constant 0 : i32
    return %c0_i32, %c0_i32_0 : i32, i32
  }
  func.func @transform_2(%arg0: i32) -> (i32, i32) {
    %c0_i32 = arith.constant 0 : i32
    %c0_i32_0 = arith.constant 0 : i32
    %c0_i32_1 = arith.constant 0 : i32
    return %c0_i32, %c0_i32_0 : i32, i32
  }
  func.func @transform_3(%arg0: i32) -> (i32, i32) {
    %c0_i32 = arith.constant 0 : i32
    %c0_i32_0 = arith.constant 0 : i32
    return %arg0, %c0_i32 : i32, i32
  }
}

module attributes {stable_mosaic.version = 11 : i64} {
  func.func @head_kernel_folded(%arg0: i32, %arg1: memref<8x2048xbf16, #tpu.memory_space<vmem>>, %arg2: memref<2048x128xbf16, #tpu.memory_space<vmem>>, %arg3: memref<1x128xf32, #tpu.memory_space<vmem>>, %arg4: memref<8x128xf32, #tpu.memory_space<vmem>>) attributes {dimension_semantics = [#tpu.dimension_semantics<parallel>], iteration_bounds = array<i64: 1>, scalar_prefetch = 0 : i64, scratch_operands = 0 : i64, tpu.core_type = #tpu.core_type<tc>, window_params = [{transform_indices = @transform_0, window_bounds = array<i64: 8, 2048>}, {pipeline_mode = #tpu.pipeline_mode<synchronous>, transform_indices = @transform_1, window_bounds = array<i64: 2048, 128>}, {pipeline_mode = #tpu.pipeline_mode<synchronous>, transform_indices = @transform_2, window_bounds = array<i64: 1, 128>}, {transform_indices = @transform_3, window_bounds = array<i64: 8, 128>}]} {
    %c0 = arith.constant 0 : index
    %c0_0 = arith.constant 0 : index
    %0 = vector.load %arg1[%c0, %c0_0] : memref<8x2048xbf16, #tpu.memory_space<vmem>>, vector<8x2048xbf16>
    %c0_1 = arith.constant 0 : index
    %c0_2 = arith.constant 0 : index
    %1 = vector.load %arg2[%c0_1, %c0_2] : memref<2048x128xbf16, #tpu.memory_space<vmem>>, vector<2048x128xbf16>
    %cst = arith.constant dense<0.000000e+00> : vector<8x128xf32>
    %2 = tpu.matmul %0, %1, %cst {dimension_numbers = #tpu.dot_dimension_numbers<[1], [0], [0], [1], [0, 0, 1, 1], [], []>} : vector<8x2048xbf16>, vector<2048x128xbf16>, vector<8x128xf32> -> vector<8x128xf32>
    %c0_3 = arith.constant 0 : index
    %c0_4 = arith.constant 0 : index
    %3 = vector.load %arg3[%c0_3, %c0_4] : memref<1x128xf32, #tpu.memory_space<vmem>>, vector<1x128xf32>
    %4 = vector.broadcast %3 : vector<1x128xf32> to vector<8x128xf32>
    %5 = arith.addf %2, %4 : vector<8x128xf32>
    %c0_5 = arith.constant 0 : index
    %c0_6 = arith.constant 0 : index
    %6 = vector.load %arg4[%c0_5, %c0_6] : memref<8x128xf32, #tpu.memory_space<vmem>>, vector<8x128xf32>
    tpu.vector_store %arg4[%c0_5, %c0_6], %5 {strides = array<i32>} : memref<8x128xf32, #tpu.memory_space<vmem>>, vector<8x128xf32>,
    return
  }
  func.func @transform_0(%arg0: i32) -> (i32, i32) {
    %c0_i32 = arith.constant 0 : i32
    %c0_i32_0 = arith.constant 0 : i32
    return %arg0, %c0_i32 : i32, i32
  }
  func.func @transform_1(%arg0: i32) -> (i32, i32) {
    %c0_i32 = arith.constant 0 : i32
    %c0_i32_0 = arith.constant 0 : i32
    %c0_i32_1 = arith.constant 0 : i32
    return %c0_i32, %c0_i32_0 : i32, i32
  }
  func.func @transform_2(%arg0: i32) -> (i32, i32) {
    %c0_i32 = arith.constant 0 : i32
    %c0_i32_0 = arith.constant 0 : i32
    %c0_i32_1 = arith.constant 0 : i32
    return %c0_i32, %c0_i32_0 : i32, i32
  }
  func.func @transform_3(%arg0: i32) -> (i32, i32) {
    %c0_i32 = arith.constant 0 : i32
    %c0_i32_0 = arith.constant 0 : i32
    return %arg0, %c0_i32 : i32, i32
  }
}

</mosaic_0001>

<bundles_post_ra>
// kernel: tpu_custom_call.1
= control target key start
LH: loop header
LB: loop body
LE: loop exit
PB: predicated region body
PF: predicated region fallthrough
CT: control target
= control target key end

     0   :  { %8 = vsyncpa [#allocation3], 0  ;;  %s2047_s0 = inlined_call_operand.hbm [shape: bf16[8,2048], index: 0, kind: input, shape index: {}]   ;;  %s2048_s1 = inlined_call_operand.hbm [shape: bf16[2048,128], index: 1, kind: input, shape index: {}]   ;;  %s2049_s2 = inlined_call_operand.vmem [shape: f32[1,128], index: 2, kind: input, shape index: {}]   ;;  %s2050_s3 = inlined_call_operand.hbm [shape: f32[8,128], index: 3, kind: output, shape index: {}]  }
   0x1   :  { %9 = vsyncpa [#allocation6], 0 }
   0x2   :  { %10 = vsyncpa [#allocation4], 0  ;;  %s2010_s12 = smov [#allocation2]   ;;  %s2011_s14 = smov [#allocation5]  }
   0x3   :  { %s17_s13 = sshll.u32 %s2010_s12, 4  ;;  %s26_s15 = sshll.u32 %s2011_s14, 4  ;;  %s18_s13 = int_to_ptr.vmem [resolvable:$true] %s17_s13  ;;  %s27_s15 = int_to_ptr.vmem [resolvable:$true] %s26_s15 }
   0x4   :  { %s1952_s16 = scalar_lea.vmem %s18_s13, 1024  ;;  %p1957_p1 = scmp.lt.s32.totalorder %s18_s13, %s18_s13 }
   0x5   :  { %p1953_p0 = scmp.ne.s32.totalorder %s18_s13, %s1952_s16  ;;  %p1958_p2 = scmp.lt.s32.totalorder %s1952_s16, %s1952_s16 }
   0x7   :  { %p1959_p3 = por %p1958_p2, %p1957_p1 }
   0x9   :  { %p1960_p4 = pnand %p1959_p3, %p1953_p0 }
   0xb   :  { %1963 = shalt.err (!%p1960_p4)
}
   0xc   :  { %20 = dma.hbm_to_vmem [thread:$0]  %s2047_s0, 1024, %s18_s13, [#allocation3]  }
   0xd   :  { %s1972_s19 = scalar_lea.vmem %s27_s15, 16384  ;;  %p1977_p6 = scmp.lt.s32.totalorder %s27_s15, %s27_s15 }
   0xe   :  { %p1973_p5 = scmp.ne.s32.totalorder %s27_s15, %s1972_s19  ;;  %p1978_p7 = scmp.lt.s32.totalorder %s1972_s19, %s1972_s19 }
  0x10   :  { %p1979_p8 = por %p1978_p7, %p1977_p6 }
  0x12   :  { %p1980_p9 = pnand %p1979_p8, %p1973_p5 }
  0x14   :  { %1983 = shalt.err (!%p1980_p9)
}
  0x15   :  { %s2012_s20 = smov 64   ;;  %s2013_s21 = smov 4  }
  0x16   :  { %32 = dma.hbm_to_vmem [thread:$0]  %s2048_s1, 16384, %s27_s15, [#allocation6], %s2012_s20, %s2012_s20, %s2013_s21  }
  0x17   :  { %2004 = dma.done.wait [#allocation3], 1024  }
  0x18   :  { %2005 = vsyncadd [#allocation3], 4294966272 }
  0x19   :  { %2006 = dma.done.wait [#allocation6], 16384  }
  0x1a   :  { %2007 = vsyncadd [#allocation6], 4294950912  ;;  %v1800_v0 = vld [vmem:[#allocation5 + $0x78] sm:$0xff]   ;;  %v1804_v4 = vld [vmem:[#allocation5 + $0x70] sm:$0xff]  }
  0x1b   :  { %v1801_v1 = vld [vmem:[#allocation5 + $0xf8] sm:$0xff]   ;;  %1619 = vmatprep.subr.bf16.mxu0 %v1800_v0  ;;  %v1805_v5 = vld [vmem:[#allocation5 + $0xf0] sm:$0xff]   ;;  %v1808_v8 = vld [vmem:[#allocation5 + $0x68] sm:$0xff]  }
  0x1c   :  { %v1802_v2 = vld [vmem:[#allocation5 + $0x38] sm:$0xff]   ;;  %1641 = vmatprep.subr.bf16.mxu1 %v1801_v1  ;;  %v1806_v6 = vld [vmem:[#allocation5 + $0x30] sm:$0xff]   ;;  %v1809_v9 = vld [vmem:[#allocation5 + $0xe8] sm:$0xff]  }
  0x1d   :  { %v1803_v3 = vld [vmem:[#allocation5 + $0xb8] sm:$0xff]   ;;  %1620 = vmatpush3.bf16.msra.mxu0 %v1802_v2  ;;  %v1807_v7 = vld [vmem:[#allocation5 + $0xb0] sm:$0xff]   ;;  %v1810_v10 = vld [vmem:[#allocation5 + $0x28] sm:$0xff]  }
  0x1e   :  { %1642 = vmatpush3.bf16.msra.mxu1 %v1803_v3  ;;  %1621 = vmatprep.subr.bf16.mxu0 %v1804_v4  ;;  %v1811_v11 = vld [vmem:[#allocation5 + $0xa8] sm:$0xff]   ;;  %v1812_v12 = vld [vmem:[#allocation5 + $0x60] sm:$0xff]   ;;  %v1816_v16 = vld [vmem:[#allocation5 + $0x58] sm:$0xff]  }
  0x1f   :  { %1643 = vmatprep.subr.bf16.mxu1 %v1805_v5  ;;  %v1813_v13 = vld [vmem:[#allocation5 + $0xe0] sm:$0xff]   ;;  %v1817_v17 = vld [vmem:[#allocation5 + $0xd8] sm:$0xff]   ;;  %v1820_v20 = vld [vmem:[#allocation5 + $0x50] sm:$0xff]  }
  0x20   :  { %v1814_v14 = vld [vmem:[#allocation5 + $0x20] sm:$0xff]   ;;  %v1818_v18 = vld [vmem:[#allocation5 + $0x18] sm:$0xff]   ;;  %v1821_v21 = vld [vmem:[#allocation5 + $0xd0] sm:$0xff]  }
  0x21   :  { %1622 = vmatpush3.bf16.msra.mxu0 %v1806_v6  ;;  %v1815_v15 = vld [vmem:[#allocation5 + $0xa0] sm:$0xff]   ;;  %v1819_v19 = vld [vmem:[#allocation5 + $0x98] sm:$0xff]   ;;  %v1822_v22 = vld [vmem:[#allocation5 + $0x10] sm:$0xff]  }
  0x22   :  { %1644 = vmatpush3.bf16.msra.mxu1 %v1807_v7  ;;  %1623 = vmatprep.subr.bf16.mxu0 %v1808_v8  ;;  %v1823_v23 = vld [vmem:[#allocation5 + $0x90] sm:$0xff]   ;;  %v1824_v24 = vld [vmem:[#allocation5 + $0x48] sm:$0xff]   ;;  %v1828_v28 = vld [vmem:[#allocation5 + $0x40] sm:$0xff]  }
  0x23   :  { %1645 = vmatprep.subr.bf16.mxu1 %v1809_v9  ;;  %v1825_v25 = vld [vmem:[#allocation5 + $0xc8] sm:$0xff]   ;;  %v1829_v29 = vld [vmem:[#allocation5 + $0xc0] sm:$0xff]   ;;  %v1836_v38 = vld [vmem:[#allocation5 + $0x178] sm:$0xff]  }
  0x24   :  { %v1826_v26 = vld [vmem:[#allocation5 + $0x8] sm:$0xff]   ;;  %v1830_v30 = vld [vmem:[#allocation5] sm:$0xff]   ;;  %v1837_v39 = vld [vmem:[#allocation5 + $0x1f8] sm:$0xff]  }
  0x25   :  { %1624 = vmatpush3.bf16.msra.mxu0 %v1810_v10  ;;  %v1827_v27 = vld [vmem:[#allocation5 + $0x88] sm:$0xff]   ;;  %v1831_v31 = vld [vmem:[#allocation5 + $0x80] sm:$0xff]   ;;  %v1838_v40 = vld [vmem:[#allocation5 + $0x138] sm:$0xff]  }
  0x26   :  { %1646 = vmatpush3.bf16.msra.mxu1 %v1811_v11  ;;  %1625 = vmatprep.subr.bf16.mxu0 %v1812_v12  ;;  %v42_v32 = vld [vmem:[#allocation2] sm:$0xff]  ;;  %v43_v33 = vld [vmem:[#allocation2 + $0x8] sm:$0xff]  ;;  %v1839_v41 = vld [vmem:[#allocation5 + $0x1b8] sm:$0xff]  }
  0x27   :  { %1647 = vmatprep.subr.bf16.mxu1 %v1813_v13  ;;  %v1475_v34 = vcombine.low %v42_v32, %v42_v32  ;;  %v1476_v35 = vcombine.high %v42_v32, %v42_v32  ;;  %v1477_v36 = vcombine.low %v43_v33, %v43_v33  ;;  %v1478_v37 = vcombine.high %v43_v33, %v43_v33  ;;  %v1840_v42 = vld [vmem:[#allocation5 + $0x170] sm:$0xff]   ;;  %v1844_v46 = vld [vmem:[#allocation5 + $0x168] sm:$0xff]   ;;  %v1848_v50 = vld [vmem:[#allocation5 + $0x160] sm:$0xff]  }
  0x28   :  { %v1841_v43 = vld [vmem:[#allocation5 + $0x1f0] sm:$0xff]   ;;  %v1845_v47 = vld [vmem:[#allocation5 + $0x1e8] sm:$0xff]   ;;  %v1849_v51 = vld [vmem:[#allocation5 + $0x1e0] sm:$0xff]  }
  0x29   :  { %1626 = vmatpush3.bf16.msra.mxu0 %v1814_v14  ;;  %1169 = vmatprep.mubr.bf16.mxu0 %v1476_v35  ;;  %v1842_v44 = vld [vmem:[#allocation5 + $0x130] sm:$0xff]   ;;  %v1846_v48 = vld [vmem:[#allocation5 + $0x128] sm:$0xff]   ;;  %v1850_v52 = vld [vmem:[#allocation5 + $0x120] sm:$0xff]  }
  0x2a   :  { %1648 = vmatpush3.bf16.msra.mxu1 %v1815_v15  ;;  %1627 = vmatprep.subr.bf16.mxu0 %v1816_v16  ;;  %v1843_v45 = vld [vmem:[#allocation5 + $0x1b0] sm:$0xff]   ;;  %v1847_v49 = vld [vmem:[#allocation5 + $0x1a8] sm:$0xff]   ;;  %v1851_v53 = vld [vmem:[#allocation5 + $0x1a0] sm:$0xff]  }
  0x2b   :  { %1649 = vmatprep.subr.bf16.mxu1 %v1817_v17  ;;  %1209 = vmatprep.mubr.bf16.mxu1 %v1478_v37  ;;  %v1852_v54 = vld [vmem:[#allocation5 + $0x158] sm:$0xff]   ;;  %v1856_v58 = vld [vmem:[#allocation5 + $0x150] sm:$0xff]   ;;  %v1860_v62 = vld [vmem:[#allocation5 + $0x148] sm:$0xff]  }
  0x2c   :  { %v1853_v55 = vld [vmem:[#allocation5 + $0x1d8] sm:$0xff]   ;;  %v1857_v59 = vld [vmem:[#allocation5 + $0x1d0] sm:$0xff]   ;;  %v1861_v63 = vld [vmem:[#allocation5 + $0x1c8] sm:$0xff]  }
  0x2d   :  { %1628 = vmatpush3.bf16.msra.mxu0 %v1818_v18  ;;  %v1854_v56 = vld [vmem:[#allocation5 + $0x118] sm:$0xff]   ;;  %v1858_v60 = vld [vmem:[#allocation5 + $0x110] sm:$0xff]   ;;  %v1862_v0 = vld [vmem:[#allocation5 + $0x108] sm:$0xff]  }
  0x2e   :  { %1650 = vmatpush3.bf16.msra.mxu1 %v1819_v19  ;;  %1629 = vmatprep.subr.bf16.mxu0 %v1820_v20  ;;  %v1855_v57 = vld [vmem:[#allocation5 + $0x198] sm:$0xff]   ;;  %v1859_v61 = vld [vmem:[#allocation5 + $0x190] sm:$0xff]   ;;  %v1863_v1 = vld [vmem:[#allocation5 + $0x188] sm:$0xff]  }
  0x2f   :  { %1651 = vmatprep.subr.bf16.mxu1 %v1821_v21  ;;  %v1864_v2 = vld [vmem:[#allocation5 + $0x140] sm:$0xff]   ;;  %v44_v6 = vld [vmem:[#allocation2 + $0x10] sm:$0xff]  ;;  %v45_v9 = vld [vmem:[#allocation2 + $0x18] sm:$0xff] }
  0x30   :  { %v1865_v3 = vld [vmem:[#allocation5 + $0x1c0] sm:$0xff]   ;;  %v1479_v7 = vcombine.low %v44_v6, %v44_v6  ;;  %v1480_v8 = vcombine.high %v44_v6, %v44_v6  ;;  %v1481_v10 = vcombine.low %v45_v9, %v45_v9  ;;  %v1482_v11 = vcombine.high %v45_v9, %v45_v9  ;;  %v1872_v12 = vld [vmem:[#allocation5 + $0x278] sm:$0xff]   ;;  %v1876_v16 = vld [vmem:[#allocation5 + $0x270] sm:$0xff]  }
  0x31   :  { %1630 = vmatpush3.bf16.msra.mxu0 %v1822_v22  ;;  %v1866_v4 = vld [vmem:[#allocation5 + $0x100] sm:$0xff]   ;;  %v1873_v13 = vld [vmem:[#allocation5 + $0x2f8] sm:$0xff]   ;;  %v1877_v17 = vld [vmem:[#allocation5 + $0x2f0] sm:$0xff]  }
  0x32   :  { %1652 = vmatpush3.bf16.msra.mxu1 %v1823_v23  ;;  %1631 = vmatprep.subr.bf16.mxu0 %v1824_v24  ;;  %v1867_v5 = vld [vmem:[#allocation5 + $0x180] sm:$0xff]   ;;  %v1874_v14 = vld [vmem:[#allocation5 + $0x238] sm:$0xff]   ;;  %v1878_v18 = vld [vmem:[#allocation5 + $0x230] sm:$0xff]  }
  0x33   :  { %1653 = vmatprep.subr.bf16.mxu1 %v1825_v25  ;;  %v1875_v15 = vld [vmem:[#allocation5 + $0x2b8] sm:$0xff]   ;;  %v1879_v19 = vld [vmem:[#allocation5 + $0x2b0] sm:$0xff]   ;;  %v1880_v20 = vld [vmem:[#allocation5 + $0x268] sm:$0xff]  }
  0x34   :  { %v1881_v21 = vld [vmem:[#allocation5 + $0x2e8] sm:$0xff]   ;;  %v1884_v24 = vld [vmem:[#allocation5 + $0x260] sm:$0xff]   ;;  %v1892_v32 = vld [vmem:[#allocation5 + $0x250] sm:$0xff]  }
  0x35   :  { %1632 = vmatpush3.bf16.msra.mxu0 %v1826_v26  ;;  %v1882_v22 = vld [vmem:[#allocation5 + $0x228] sm:$0xff]   ;;  %v1885_v25 = vld [vmem:[#allocation5 + $0x2e0] sm:$0xff]   ;;  %v1893_v33 = vld [vmem:[#allocation5 + $0x2d0] sm:$0xff]  }
  0x36   :  { %1654 = vmatpush3.bf16.msra.mxu1 %v1827_v27  ;;  %1633 = vmatprep.subr.bf16.mxu0 %v1828_v28  ;;  %v1883_v23 = vld [vmem:[#allocation5 + $0x2a8] sm:$0xff]   ;;  %v1886_v26 = vld [vmem:[#allocation5 + $0x220] sm:$0xff]   ;;  %v1888_v28 = vld [vmem:[#allocation5 + $0x258] sm:$0xff]  }
  0x37   :  { %1655 = vmatprep.subr.bf16.mxu1 %v1829_v29  ;;  %v1887_v27 = vld [vmem:[#allocation5 + $0x2a0] sm:$0xff]   ;;  %v1889_v29 = vld [vmem:[#allocation5 + $0x2d8] sm:$0xff]   ;;  %v1895_v35 = vld [vmem:[#allocation5 + $0x290] sm:$0xff]  }
  0x38   :  { %v1897_v37 = vld [vmem:[#allocation5 + $0x2c8] sm:$0xff]   ;;  %v1928_v6 = vld [vmem:[#allocation5 + $0x350] sm:$0xff]  }
  0x39   :  { %1634 = vmatpush3.bf16.msra.mxu0 %v1830_v30  ;;  %v1890_v30 = vld [vmem:[#allocation5 + $0x218] sm:$0xff]   ;;  %v1931_v9 = vld [vmem:[#allocation5 + $0x390] sm:$0xff]  }
  0x3a   :  { %1656 = vmatpush3.bf16.msra.mxu1 %v1831_v31  ;;  %1663 = vmatprep.subr.bf16.mxu0 %v1836_v38  ;;  %v1891_v31 = vld [vmem:[#allocation5 + $0x298] sm:$0xff]   ;;  %v1898_v38 = vld [vmem:[#allocation5 + $0x208] sm:$0xff]  }
  0x3b   :  { %1685 = vmatprep.subr.bf16.mxu1 %v1837_v39  ;;  %v1899_v39 = vld [vmem:[#allocation5 + $0x288] sm:$0xff]  }
  0x3c   :  { %1170 = vmatmul.mubr.bf16.vlgmr.msra.gmra.mxu0 %v1475_v34  ;;  %v1894_v34 = vld [vmem:[#allocation5 + $0x210] sm:$0xff]  }
  0x3d   :  { %1210 = vmatmul.mubr.bf16.vlgmr.msra.gmra.mxu1 %v1477_v36  ;;  %1664 = vmatpush3.bf16.msra.mxu0 %v1838_v40  ;;  %v1896_v36 = vld [vmem:[#allocation5 + $0x248] sm:$0xff]   ;;  %v1900_v40 = vld [vmem:[#allocation5 + $0x240] sm:$0xff]  }
  0x3e   :  { %1686 = vmatpush3.bf16.msra.mxu1 %v1839_v41  ;;  %1665 = vmatprep.subr.bf16.mxu0 %v1840_v42  ;;  %v1901_v41 = vld [vmem:[#allocation5 + $0x2c0] sm:$0xff]  }
  0x3f   :  { %1687 = vmatprep.subr.bf16.mxu1 %v1841_v43  ;;  %1249 = vmatprep.mubr.bf16.mxu0 %v1480_v8  ;;  %v1902_v42 = vld [vmem:[#allocation5 + $0x200] sm:$0xff]   ;;  %v1930_v8 = vld [vmem:[#allocation5 + $0x310] sm:$0xff]  }
  0x40   :  { %1289 = vmatprep.mubr.bf16.mxu1 %v1482_v11  ;;  %v1903_v43 = vld [vmem:[#allocation5 + $0x280] sm:$0xff]   ;;  %v1933_v11 = vld [vmem:[#allocation5 + $0x3c8] sm:$0xff]  }
  0x41   :  { %1666 = vmatpush3.bf16.msra.mxu0 %v1842_v44  ;;  %v46_v44 = vld [vmem:[#allocation2 + $0x20] sm:$0xff] }
  0x42   :  { %1688 = vmatpush3.bf16.msra.mxu1 %v1843_v45  ;;  %1667 = vmatprep.subr.bf16.mxu0 %v1844_v46  ;;  %v47_v45 = vld [vmem:[#allocation2 + $0x28] sm:$0xff]  ;;  %v1483_v46 = vcombine.low %v46_v44, %v46_v44 }
  0x43   :  { %1689 = vmatprep.subr.bf16.mxu1 %v1845_v47  ;;  %v1484_v47 = vcombine.high %v46_v44, %v46_v44 }
  0x45   :  { %1668 = vmatpush3.bf16.msra.mxu0 %v1846_v48  ;;  %v1485_v48 = vcombine.low %v47_v45, %v47_v45 }
  0x46   :  { %1690 = vmatpush3.bf16.msra.mxu1 %v1847_v49  ;;  %1669 = vmatprep.subr.bf16.mxu0 %v1848_v50  ;;  %v1486_v49 = vcombine.high %v47_v45, %v47_v45  ;;  %v1908_v50 = vld [vmem:[#allocation5 + $0x378] sm:$0xff]  }
  0x47   :  { %1691 = vmatprep.subr.bf16.mxu1 %v1849_v51  ;;  %v1909_v51 = vld [vmem:[#allocation5 + $0x3f8] sm:$0xff]  }
  0x49   :  { %1670 = vmatpush3.bf16.msra.mxu0 %v1850_v52  ;;  %v1910_v52 = vld [vmem:[#allocation5 + $0x338] sm:$0xff]  }
  0x4a   :  { %1692 = vmatpush3.bf16.msra.mxu1 %v1851_v53  ;;  %1671 = vmatprep.subr.bf16.mxu0 %v1852_v54  ;;  %v1911_v53 = vld [vmem:[#allocation5 + $0x3b8] sm:$0xff]   ;;  %v1912_v54 = vld [vmem:[#allocation5 + $0x370] sm:$0xff]  }
  0x4b   :  { %1693 = vmatprep.subr.bf16.mxu1 %v1853_v55  ;;  %v1913_v55 = vld [vmem:[#allocation5 + $0x3f0] sm:$0xff]  }
  0x4d   :  { %1672 = vmatpush3.bf16.msra.mxu0 %v1854_v56  ;;  %v1914_v56 = vld [vmem:[#allocation5 + $0x330] sm:$0xff]  }
  0x4e   :  { %1694 = vmatpush3.bf16.msra.mxu1 %v1855_v57  ;;  %1673 = vmatprep.subr.bf16.mxu0 %v1856_v58  ;;  %v1915_v57 = vld [vmem:[#allocation5 + $0x3b0] sm:$0xff]   ;;  %v1916_v58 = vld [vmem:[#allocation5 + $0x368] sm:$0xff]  }
  0x4f   :  { %1695 = vmatprep.subr.bf16.mxu1 %v1857_v59  ;;  %v1917_v59 = vld [vmem:[#allocation5 + $0x3e8] sm:$0xff]  }
  0x51   :  { %1674 = vmatpush3.bf16.msra.mxu0 %v1858_v60  ;;  %v1918_v60 = vld [vmem:[#allocation5 + $0x328] sm:$0xff]  }
  0x52   :  { %1696 = vmatpush3.bf16.msra.mxu1 %v1859_v61  ;;  %1675 = vmatprep.subr.bf16.mxu0 %v1860_v62  ;;  %v1919_v61 = vld [vmem:[#allocation5 + $0x3a8] sm:$0xff]   ;;  %v1920_v62 = vld [vmem:[#allocation5 + $0x360] sm:$0xff]  }
  0x53   :  { %1697 = vmatprep.subr.bf16.mxu1 %v1861_v63  ;;  %v1921_v63 = vld [vmem:[#allocation5 + $0x3e0] sm:$0xff]  }
  0x55   :  { %1676 = vmatpush3.bf16.msra.mxu0 %v1862_v0  ;;  %v1922_v0 = vld [vmem:[#allocation5 + $0x320] sm:$0xff]  }
  0x56   :  { %1698 = vmatpush3.bf16.msra.mxu1 %v1863_v1  ;;  %1677 = vmatprep.subr.bf16.mxu0 %v1864_v2  ;;  %v1923_v1 = vld [vmem:[#allocation5 + $0x3a0] sm:$0xff]   ;;  %v1924_v2 = vld [vmem:[#allocation5 + $0x358] sm:$0xff]  }
  0x57   :  { %1699 = vmatprep.subr.bf16.mxu1 %v1865_v3  ;;  %v1925_v3 = vld [vmem:[#allocation5 + $0x3d8] sm:$0xff]  }
  0x59   :  { %1678 = vmatpush3.bf16.msra.mxu0 %v1866_v4  ;;  %v1926_v4 = vld [vmem:[#allocation5 + $0x318] sm:$0xff]  }
  0x5a   :  { %1700 = vmatpush3.bf16.msra.mxu1 %v1867_v5  ;;  %1707 = vmatprep.subr.bf16.mxu0 %v1872_v12  ;;  %v1927_v5 = vld [vmem:[#allocation5 + $0x398] sm:$0xff]   ;;  %v1934_v12 = vld [vmem:[#allocation5 + $0x308] sm:$0xff]  }
  0x5b   :  { %1729 = vmatprep.subr.bf16.mxu1 %v1873_v13  ;;  %v1935_v13 = vld [vmem:[#allocation5 + $0x388] sm:$0xff]  }
  0x5c   :  { %1250 = vmatmul.mubr.bf16.vlgmr.msra.gmra.mxu0 %v1479_v7  ;;  %v1929_v7 = vld [vmem:[#allocation5 + $0x3d0] sm:$0xff]  }
  0x5d   :  { %1290 = vmatmul.mubr.bf16.vlgmr.msra.gmra.mxu1 %v1481_v10  ;;  %1708 = vmatpush3.bf16.msra.mxu0 %v1874_v14  ;;  %v1932_v10 = vld [vmem:[#allocation5 + $0x348] sm:$0xff]   ;;  %v1936_v14 = vld [vmem:[#allocation5 + $0x340] sm:$0xff]  }
  0x5e   :  { %1730 = vmatpush3.bf16.msra.mxu1 %v1875_v15  ;;  %1709 = vmatprep.subr.bf16.mxu0 %v1876_v16  ;;  %v1937_v15 = vld [vmem:[#allocation5 + $0x3c0] sm:$0xff]  }
  0x5f   :  { %1731 = vmatprep.subr.bf16.mxu1 %v1877_v17  ;;  %1329 = vmatprep.mubr.bf16.mxu0 %v1484_v47  ;;  %v1938_v16 = vld [vmem:[#allocation5 + $0x300] sm:$0xff]  }
  0x60   :  { %1369 = vmatprep.mubr.bf16.mxu1 %v1486_v49  ;;  %v1939_v17 = vld [vmem:[#allocation5 + $0x380] sm:$0xff]  }
  0x61   :  { %1710 = vmatpush3.bf16.msra.mxu0 %v1878_v18  ;;  %v48_v18 = vld [vmem:[#allocation2 + $0x30] sm:$0xff] }
  0x62   :  { %1732 = vmatpush3.bf16.msra.mxu1 %v1879_v19  ;;  %1711 = vmatprep.subr.bf16.mxu0 %v1880_v20  ;;  %v49_v19 = vld [vmem:[#allocation2 + $0x38] sm:$0xff]  ;;  %v1487_v20 = vcombine.low %v48_v18, %v48_v18 }
  0x63   :  { %1733 = vmatprep.subr.bf16.mxu1 %v1881_v21  ;;  %v1488_v21 = vcombine.high %v48_v18, %v48_v18 }
  0x65   :  { %1712 = vmatpush3.bf16.msra.mxu0 %v1882_v22  ;;  %v1489_v22 = vcombine.low %v49_v19, %v49_v19 }
  0x66   :  { %1734 = vmatpush3.bf16.msra.mxu1 %v1883_v23  ;;  %1713 = vmatprep.subr.bf16.mxu0 %v1884_v24  ;;  %v1490_v23 = vcombine.high %v49_v19, %v49_v19 }
  0x67   :  { %1735 = vmatprep.subr.bf16.mxu1 %v1885_v25 }
  0x69   :  { %1714 = vmatpush3.bf16.msra.mxu0 %v1886_v26  ;;  %v1474_v26 = vld [vmem:[%s2049_s2] ss:$0 sm:$0xff]  ;;  %s2014_s2 = smov [#allocation7]  }
  0x6a   :  { %1736 = vmatpush3.bf16.msra.mxu1 %v1887_v27  ;;  %1715 = vmatprep.subr.bf16.mxu0 %v1888_v28  ;;  %s1464_s24 = sshll.u32 %s2014_s2, 4  ;;  %s1465_s24 = int_to_ptr.vmem [resolvable:$true] %s1464_s24 }
  0x6b   :  { %1737 = vmatprep.subr.bf16.mxu1 %v1889_v29  ;;  %s1984_s25 = scalar_lea.vmem %s1465_s24, 128  ;;  %p1989_p11 = scmp.lt.s32.totalorder %s1465_s24, %s1465_s24 }
  0x6c   :  { %p1985_p10 = scmp.ne.s32.totalorder %s1465_s24, %s1984_s25  ;;  %p1990_p12 = scmp.lt.s32.totalorder %s1984_s25, %s1984_s25 }
  0x6d   :  { %1716 = vmatpush3.bf16.msra.mxu0 %v1890_v30 }
  0x6e   :  { %1738 = vmatpush3.bf16.msra.mxu1 %v1891_v31  ;;  %1717 = vmatprep.subr.bf16.mxu0 %v1892_v32  ;;  %p1991_p13 = por %p1990_p12, %p1989_p11 }
  0x6f   :  { %1739 = vmatprep.subr.bf16.mxu1 %v1893_v33 }
  0x70   :  { %p1992_p0 = pnand %p1991_p13, %p1985_p10 }
  0x71   :  { %1718 = vmatpush3.bf16.msra.mxu0 %v1894_v34 }
  0x72   :  { %1740 = vmatpush3.bf16.msra.mxu1 %v1895_v35  ;;  %1719 = vmatprep.subr.bf16.mxu0 %v1896_v36 }
  0x73   :  { %1741 = vmatprep.subr.bf16.mxu1 %v1897_v37 }
  0x75   :  { %1720 = vmatpush3.bf16.msra.mxu0 %v1898_v38 }
  0x76   :  { %1742 = vmatpush3.bf16.msra.mxu1 %v1899_v39  ;;  %1721 = vmatprep.subr.bf16.mxu0 %v1900_v40 }
  0x77   :  { %1743 = vmatprep.subr.bf16.mxu1 %v1901_v41 }
  0x79   :  { %1722 = vmatpush3.bf16.msra.mxu0 %v1902_v42 }
  0x7a   :  { %1744 = vmatpush3.bf16.msra.mxu1 %v1903_v43  ;;  %1751 = vmatprep.subr.bf16.mxu0 %v1908_v50 }
  0x7b   :  { %1773 = vmatprep.subr.bf16.mxu1 %v1909_v51 }
  0x7c   :  { %1330 = vmatmul.mubr.bf16.vlgmr.msra.gmra.mxu0 %v1483_v46 }
  0x7d   :  { %1370 = vmatmul.mubr.bf16.vlgmr.msra.gmra.mxu1 %v1485_v48  ;;  %1752 = vmatpush3.bf16.msra.mxu0 %v1910_v52 }
  0x7e   :  { %1774 = vmatpush3.bf16.msra.mxu1 %v1911_v53  ;;  %1753 = vmatprep.subr.bf16.mxu0 %v1912_v54 }
  0x7f   :  { %1775 = vmatprep.subr.bf16.mxu1 %v1913_v55  ;;  %1409 = vmatprep.mubr.bf16.mxu0 %v1488_v21 }
  0x80   :  { %1449 = vmatprep.mubr.bf16.mxu1 %v1490_v23 }
  0x81   :  { %1754 = vmatpush3.bf16.msra.mxu0 %v1914_v56 }
  0x82   :  { %1776 = vmatpush3.bf16.msra.mxu1 %v1915_v57  ;;  %1755 = vmatprep.subr.bf16.mxu0 %v1916_v58 }
  0x83   :  { %1777 = vmatprep.subr.bf16.mxu1 %v1917_v59 }
  0x85   :  { %1756 = vmatpush3.bf16.msra.mxu0 %v1918_v60 }
  0x86   :  { %1778 = vmatpush3.bf16.msra.mxu1 %v1919_v61  ;;  %1757 = vmatprep.subr.bf16.mxu0 %v1920_v62 }
  0x87   :  { %1779 = vmatprep.subr.bf16.mxu1 %v1921_v63 }
  0x89   :  { %1758 = vmatpush3.bf16.msra.mxu0 %v1922_v0 }
  0x8a   :  { %1780 = vmatpush3.bf16.msra.mxu1 %v1923_v1  ;;  %1759 = vmatprep.subr.bf16.mxu0 %v1924_v2 }
  0x8b   :  { %1781 = vmatprep.subr.bf16.mxu1 %v1925_v3 }
  0x8d   :  { %1760 = vmatpush3.bf16.msra.mxu0 %v1926_v4 }
  0x8e   :  { %1782 = vmatpush3.bf16.msra.mxu1 %v1927_v5  ;;  %1761 = vmatprep.subr.bf16.mxu0 %v1928_v6 }
  0x8f   :  { %1783 = vmatprep.subr.bf16.mxu1 %v1929_v7 }
  0x91   :  { %1762 = vmatpush3.bf16.msra.mxu0 %v1930_v8 }
  0x92   :  { %1784 = vmatpush3.bf16.msra.mxu1 %v1931_v9  ;;  %1763 = vmatprep.subr.bf16.mxu0 %v1932_v10 }
  0x93   :  { %1785 = vmatprep.subr.bf16.mxu1 %v1933_v11 }
  0x95   :  { %1764 = vmatpush3.bf16.msra.mxu0 %v1934_v12 }
  0x96   :  { %1786 = vmatpush3.bf16.msra.mxu1 %v1935_v13  ;;  %1765 = vmatprep.subr.bf16.mxu0 %v1936_v14 }
  0x97   :  { %1787 = vmatprep.subr.bf16.mxu1 %v1937_v15 }
  0x99   :  { %1766 = vmatpush3.bf16.msra.mxu0 %v1938_v16 }
  0x9a   :  { %1788 = vmatpush3.bf16.msra.mxu1 %v1939_v17 }
  0x9c   :  { %1410 = vmatmul.mubr.bf16.vlgmr.msra.gmra.mxu0 %v1487_v20 }
  0x9d   :  { %1450 = vmatmul.mubr.bf16.vlgmr.msra.gmra.mxu1 %v1489_v22 }
  0xfc   :  { %v1635_v24 = vpop.f32.mrf.mxu0 }
  0xfd   :  { %v1657_v25 = vpop.f32.mrf.mxu1 }
  0xfe   :  { %v1636_v27 = vpop.f32.mrf.mxu0 }
  0xff   :  { %v1658_v28 = vpop.f32.mrf.mxu1  ;;  %v1637_v29 = vadd.f32 %v1636_v27, %v1635_v24 }
 0x100   :  { %v1659_v30 = vadd.f32 %v1658_v28, %v1657_v25  ;;  %v1638_v31 = vpop.f32.mrf.mxu0 }
 0x101   :  { %v1660_v32 = vpop.f32.mrf.mxu1  ;;  %v1172_v33 = vadd.f32 %v1637_v29, %v1474_v26 }
 0x102   :  { %v1639_v34 = vpop.f32.mrf.mxu0 }
 0x103   :  { %v1661_v35 = vpop.f32.mrf.mxu1  ;;  %v1212_v36 = vadd.f32 %v1659_v30, %v1172_v33 }
 0x11c   :  { %v1679_v37 = vpop.f32.mrf.mxu0 }
 0x11d   :  { %v1701_v38 = vpop.f32.mrf.mxu1 }
 0x11e   :  { %v1680_v39 = vpop.f32.mrf.mxu0 }
 0x11f   :  { %v1702_v40 = vpop.f32.mrf.mxu1  ;;  %v1681_v53 = vadd.f32 %v1680_v39, %v1679_v37 }
 0x120   :  { %v1682_v41 = vpop.f32.mrf.mxu0  ;;  %v1703_v55 = vadd.f32 %v1702_v40, %v1701_v38 }
 0x121   :  { %v1704_v42 = vpop.f32.mrf.mxu1  ;;  %v1252_v54 = vadd.f32 %v1681_v53, %v1212_v36 }
 0x122   :  { %v1683_v43 = vpop.f32.mrf.mxu0 }
 0x123   :  { %v1705_v44 = vpop.f32.mrf.mxu1  ;;  %v1292_v57 = vadd.f32 %v1703_v55, %v1252_v54 }
 0x13c   :  { %v1723_v45 = vpop.f32.mrf.mxu0 }
 0x13d   :  { %v1745_v46 = vpop.f32.mrf.mxu1 }
 0x13e   :  { %v1724_v47 = vpop.f32.mrf.mxu0 }
 0x13f   :  { %v1746_v48 = vpop.f32.mrf.mxu1  ;;  %v1725_v56 = vadd.f32 %v1724_v47, %v1723_v45 }
 0x140   :  { %v1726_v49 = vpop.f32.mrf.mxu0  ;;  %v1747_v59 = vadd.f32 %v1746_v48, %v1745_v46 }
 0x141   :  { %v1748_v50 = vpop.f32.mrf.mxu1  ;;  %v1332_v58 = vadd.f32 %v1725_v56, %v1292_v57 }
 0x142   :  { %v1727_v51 = vpop.f32.mrf.mxu0 }
 0x143   :  { %v1749_v52 = vpop.f32.mrf.mxu1  ;;  %v1372_v63 = vadd.f32 %v1747_v59, %v1332_v58 }
 0x15c   :  { %v1767_v60 = vpop.f32.mrf.mxu0 }
 0x15d   :  { %v1789_v61 = vpop.f32.mrf.mxu1 }
 0x15e   :  { %v1768_v62 = vpop.f32.mrf.mxu0 }
 0x15f   :  { %v1769_v0 = vadd.f32 %v1768_v62, %v1767_v60  ;;  %v1790_v1 = vpop.f32.mrf.mxu1 }
 0x160   :  { %v1770_v2 = vpop.f32.mrf.mxu0  ;;  %v1791_v4 = vadd.f32 %v1790_v1, %v1789_v61 }
 0x161   :  { %v1412_v3 = vadd.f32 %v1769_v0, %v1372_v63  ;;  %v1792_v5 = vpop.f32.mrf.mxu1 }
 0x162   :  { %v1771_v6 = vpop.f32.mrf.mxu0 }
 0x163   :  { %v1452_v7 = vadd.f32 %v1791_v4, %v1412_v3  ;;  %v1793_v8 = vpop.f32.mrf.mxu1 }
 0x165   :  { %1457 = vst [vmem:[#allocation7] sm:$0xff] %v1452_v7 }
 0x166   :  { %1995 = shalt.err (!%p1992_p0)
}
 0x167   :  { %1467 = dma.vmem_to_hbm [thread:$0]  %s1465_s24, 128, %s2050_s3, [#allocation4]  }
 0x168   :  { %2008 = dma.done.wait [#allocation4], 128  }
 0x169   :  { %2009 = vsyncadd [#allocation4], 4294967168 }
 0x16a   :  { %1471 = vsyncpa [#allocation3], 1 }
 0x16b   :  { %1472 = vsyncpa [#allocation6], 1 }
 0x16c   :  { %1473 = vsyncpa [#allocation4], 1 }

// kernel: tpu_custom_call.1
= control target key start
LH: loop header
LB: loop body
LE: loop exit
PB: predicated region body
PF: predicated region fallthrough
CT: control target
= control target key end

     0   :  { %8 = vsyncpa [#allocation3], 0  ;;  %s2047_s0 = inlined_call_operand.hbm [shape: bf16[8,2048], index: 0, kind: input, shape index: {}]   ;;  %s2048_s1 = inlined_call_operand.hbm [shape: bf16[2048,128], index: 1, kind: input, shape index: {}]   ;;  %s2049_s2 = inlined_call_operand.vmem [shape: f32[1,128], index: 2, kind: input, shape index: {}]   ;;  %s2050_s3 = inlined_call_operand.hbm [shape: f32[8,128], index: 3, kind: output, shape index: {}]  }
   0x1   :  { %9 = vsyncpa [#allocation6], 0 }
   0x2   :  { %10 = vsyncpa [#allocation4], 0  ;;  %s2010_s12 = smov [#allocation2]   ;;  %s2011_s14 = smov [#allocation5]  }
   0x3   :  { %s17_s13 = sshll.u32 %s2010_s12, 4  ;;  %s26_s15 = sshll.u32 %s2011_s14, 4  ;;  %s18_s13 = int_to_ptr.vmem [resolvable:$true] %s17_s13  ;;  %s27_s15 = int_to_ptr.vmem [resolvable:$true] %s26_s15 }
   0x4   :  { %s1952_s16 = scalar_lea.vmem %s18_s13, 1024  ;;  %p1957_p1 = scmp.lt.s32.totalorder %s18_s13, %s18_s13 }
   0x5   :  { %p1953_p0 = scmp.ne.s32.totalorder %s18_s13, %s1952_s16  ;;  %p1958_p2 = scmp.lt.s32.totalorder %s1952_s16, %s1952_s16 }
   0x7   :  { %p1959_p3 = por %p1958_p2, %p1957_p1 }
   0x9   :  { %p1960_p4 = pnand %p1959_p3, %p1953_p0 }
   0xb   :  { %1963 = shalt.err (!%p1960_p4)
}
   0xc   :  { %20 = dma.hbm_to_vmem [thread:$0]  %s2047_s0, 1024, %s18_s13, [#allocation3]  }
   0xd   :  { %s1972_s19 = scalar_lea.vmem %s27_s15, 16384  ;;  %p1977_p6 = scmp.lt.s32.totalorder %s27_s15, %s27_s15 }
   0xe   :  { %p1973_p5 = scmp.ne.s32.totalorder %s27_s15, %s1972_s19  ;;  %p1978_p7 = scmp.lt.s32.totalorder %s1972_s19, %s1972_s19 }
  0x10   :  { %p1979_p8 = por %p1978_p7, %p1977_p6 }
  0x12   :  { %p1980_p9 = pnand %p1979_p8, %p1973_p5 }
  0x14   :  { %1983 = shalt.err (!%p1980_p9)
}
  0x15   :  { %s2012_s20 = smov 64   ;;  %s2013_s21 = smov 4  }
  0x16   :  { %32 = dma.hbm_to_vmem [thread:$0]  %s2048_s1, 16384, %s27_s15, [#allocation6], %s2012_s20, %s2012_s20, %s2013_s21  }
  0x17   :  { %2004 = dma.done.wait [#allocation3], 1024  }
  0x18   :  { %2005 = vsyncadd [#allocation3], 4294966272 }
  0x19   :  { %2006 = dma.done.wait [#allocation6], 16384  }
  0x1a   :  { %2007 = vsyncadd [#allocation6], 4294950912  ;;  %v1800_v0 = vld [vmem:[#allocation5 + $0x78] sm:$0xff]   ;;  %v1804_v4 = vld [vmem:[#allocation5 + $0x70] sm:$0xff]  }
  0x1b   :  { %v1801_v1 = vld [vmem:[#allocation5 + $0xf8] sm:$0xff]   ;;  %1619 = vmatprep.subr.bf16.mxu0 %v1800_v0  ;;  %v1805_v5 = vld [vmem:[#allocation5 + $0xf0] sm:$0xff]   ;;  %v1808_v8 = vld [vmem:[#allocation5 + $0x68] sm:$0xff]  }
  0x1c   :  { %v1802_v2 = vld [vmem:[#allocation5 + $0x38] sm:$0xff]   ;;  %1641 = vmatprep.subr.bf16.mxu1 %v1801_v1  ;;  %v1806_v6 = vld [vmem:[#allocation5 + $0x30] sm:$0xff]   ;;  %v1809_v9 = vld [vmem:[#allocation5 + $0xe8] sm:$0xff]  }
  0x1d   :  { %v1803_v3 = vld [vmem:[#allocation5 + $0xb8] sm:$0xff]   ;;  %1620 = vmatpush3.bf16.msra.mxu0 %v1802_v2  ;;  %v1807_v7 = vld [vmem:[#allocation5 + $0xb0] sm:$0xff]   ;;  %v1810_v10 = vld [vmem:[#allocation5 + $0x28] sm:$0xff]  }
  0x1e   :  { %1642 = vmatpush3.bf16.msra.mxu1 %v1803_v3  ;;  %1621 = vmatprep.subr.bf16.mxu0 %v1804_v4  ;;  %v1811_v11 = vld [vmem:[#allocation5 + $0xa8] sm:$0xff]   ;;  %v1812_v12 = vld [vmem:[#allocation5 + $0x60] sm:$0xff]   ;;  %v1816_v16 = vld [vmem:[#allocation5 + $0x58] sm:$0xff]  }
  0x1f   :  { %1643 = vmatprep.subr.bf16.mxu1 %v1805_v5  ;;  %v1813_v13 = vld [vmem:[#allocation5 + $0xe0] sm:$0xff]   ;;  %v1817_v17 = vld [vmem:[#allocation5 + $0xd8] sm:$0xff]   ;;  %v1820_v20 = vld [vmem:[#allocation5 + $0x50] sm:$0xff]  }
  0x20   :  { %v1814_v14 = vld [vmem:[#allocation5 + $0x20] sm:$0xff]   ;;  %v1818_v18 = vld [vmem:[#allocation5 + $0x18] sm:$0xff]   ;;  %v1821_v21 = vld [vmem:[#allocation5 + $0xd0] sm:$0xff]  }
  0x21   :  { %1622 = vmatpush3.bf16.msra.mxu0 %v1806_v6  ;;  %v1815_v15 = vld [vmem:[#allocation5 + $0xa0] sm:$0xff]   ;;  %v1819_v19 = vld [vmem:[#allocation5 + $0x98] sm:$0xff]   ;;  %v1822_v22 = vld [vmem:[#allocation5 + $0x10] sm:$0xff]  }
  0x22   :  { %1644 = vmatpush3.bf16.msra.mxu1 %v1807_v7  ;;  %1623 = vmatprep.subr.bf16.mxu0 %v1808_v8  ;;  %v1823_v23 = vld [vmem:[#allocation5 + $0x90] sm:$0xff]   ;;  %v1824_v24 = vld [vmem:[#allocation5 + $0x48] sm:$0xff]   ;;  %v1828_v28 = vld [vmem:[#allocation5 + $0x40] sm:$0xff]  }
  0x23   :  { %1645 = vmatprep.subr.bf16.mxu1 %v1809_v9  ;;  %v1825_v25 = vld [vmem:[#allocation5 + $0xc8] sm:$0xff]   ;;  %v1829_v29 = vld [vmem:[#allocation5 + $0xc0] sm:$0xff]   ;;  %v1836_v38 = vld [vmem:[#allocation5 + $0x178] sm:$0xff]  }
  0x24   :  { %v1826_v26 = vld [vmem:[#allocation5 + $0x8] sm:$0xff]   ;;  %v1830_v30 = vld [vmem:[#allocation5] sm:$0xff]   ;;  %v1837_v39 = vld [vmem:[#allocation5 + $0x1f8] sm:$0xff]  }
  0x25   :  { %1624 = vmatpush3.bf16.msra.mxu0 %v1810_v10  ;;  %v1827_v27 = vld [vmem:[#allocation5 + $0x88] sm:$0xff]   ;;  %v1831_v31 = vld [vmem:[#allocation5 + $0x80] sm:$0xff]   ;;  %v1838_v40 = vld [vmem:[#allocation5 + $0x138] sm:$0xff]  }
  0x26   :  { %1646 = vmatpush3.bf16.msra.mxu1 %v1811_v11  ;;  %1625 = vmatprep.subr.bf16.mxu0 %v1812_v12  ;;  %v42_v32 = vld [vmem:[#allocation2] sm:$0xff]  ;;  %v43_v33 = vld [vmem:[#allocation2 + $0x8] sm:$0xff]  ;;  %v1839_v41 = vld [vmem:[#allocation5 + $0x1b8] sm:$0xff]  }
  0x27   :  { %1647 = vmatprep.subr.bf16.mxu1 %v1813_v13  ;;  %v1475_v34 = vcombine.low %v42_v32, %v42_v32  ;;  %v1476_v35 = vcombine.high %v42_v32, %v42_v32  ;;  %v1477_v36 = vcombine.low %v43_v33, %v43_v33  ;;  %v1478_v37 = vcombine.high %v43_v33, %v43_v33  ;;  %v1840_v42 = vld [vmem:[#allocation5 + $0x170] sm:$0xff]   ;;  %v1844_v46 = vld [vmem:[#allocation5 + $0x168] sm:$0xff]   ;;  %v1848_v50 = vld [vmem:[#allocation5 + $0x160] sm:$0xff]  }
  0x28   :  { %v1841_v43 = vld [vmem:[#allocation5 + $0x1f0] sm:$0xff]   ;;  %v1845_v47 = vld [vmem:[#allocation5 + $0x1e8] sm:$0xff]   ;;  %v1849_v51 = vld [vmem:[#allocation5 + $0x1e0] sm:$0xff]  }
  0x29   :  { %1626 = vmatpush3.bf16.msra.mxu0 %v1814_v14  ;;  %1169 = vmatprep.mubr.bf16.mxu0 %v1476_v35  ;;  %v1842_v44 = vld [vmem:[#allocation5 + $0x130] sm:$0xff]   ;;  %v1846_v48 = vld [vmem:[#allocation5 + $0x128] sm:$0xff]   ;;  %v1850_v52 = vld [vmem:[#allocation5 + $0x120] sm:$0xff]  }
  0x2a   :  { %1648 = vmatpush3.bf16.msra.mxu1 %v1815_v15  ;;  %1627 = vmatprep.subr.bf16.mxu0 %v1816_v16  ;;  %v1843_v45 = vld [vmem:[#allocation5 + $0x1b0] sm:$0xff]   ;;  %v1847_v49 = vld [vmem:[#allocation5 + $0x1a8] sm:$0xff]   ;;  %v1851_v53 = vld [vmem:[#allocation5 + $0x1a0] sm:$0xff]  }
  0x2b   :  { %1649 = vmatprep.subr.bf16.mxu1 %v1817_v17  ;;  %1209 = vmatprep.mubr.bf16.mxu1 %v1478_v37  ;;  %v1852_v54 = vld [vmem:[#allocation5 + $0x158] sm:$0xff]   ;;  %v1856_v58 = vld [vmem:[#allocation5 + $0x150] sm:$0xff]   ;;  %v1860_v62 = vld [vmem:[#allocation5 + $0x148] sm:$0xff]  }
  0x2c   :  { %v1853_v55 = vld [vmem:[#allocation5 + $0x1d8] sm:$0xff]   ;;  %v1857_v59 = vld [vmem:[#allocation5 + $0x1d0] sm:$0xff]   ;;  %v1861_v63 = vld [vmem:[#allocation5 + $0x1c8] sm:$0xff]  }
  0x2d   :  { %1628 = vmatpush3.bf16.msra.mxu0 %v1818_v18  ;;  %v1854_v56 = vld [vmem:[#allocation5 + $0x118] sm:$0xff]   ;;  %v1858_v60 = vld [vmem:[#allocation5 + $0x110] sm:$0xff]   ;;  %v1862_v0 = vld [vmem:[#allocation5 + $0x108] sm:$0xff]  }
  0x2e   :  { %1650 = vmatpush3.bf16.msra.mxu1 %v1819_v19  ;;  %1629 = vmatprep.subr.bf16.mxu0 %v1820_v20  ;;  %v1855_v57 = vld [vmem:[#allocation5 + $0x198] sm:$0xff]   ;;  %v1859_v61 = vld [vmem:[#allocation5 + $0x190] sm:$0xff]   ;;  %v1863_v1 = vld [vmem:[#allocation5 + $0x188] sm:$0xff]  }
  0x2f   :  { %1651 = vmatprep.subr.bf16.mxu1 %v1821_v21  ;;  %v1864_v2 = vld [vmem:[#allocation5 + $0x140] sm:$0xff]   ;;  %v44_v6 = vld [vmem:[#allocation2 + $0x10] sm:$0xff]  ;;  %v45_v9 = vld [vmem:[#allocation2 + $0x18] sm:$0xff] }
  0x30   :  { %v1865_v3 = vld [vmem:[#allocation5 + $0x1c0] sm:$0xff]   ;;  %v1479_v7 = vcombine.low %v44_v6, %v44_v6  ;;  %v1480_v8 = vcombine.high %v44_v6, %v44_v6  ;;  %v1481_v10 = vcombine.low %v45_v9, %v45_v9  ;;  %v1482_v11 = vcombine.high %v45_v9, %v45_v9  ;;  %v1872_v12 = vld [vmem:[#allocation5 + $0x278] sm:$0xff]   ;;  %v1876_v16 = vld [vmem:[#allocation5 + $0x270] sm:$0xff]  }
  0x31   :  { %1630 = vmatpush3.bf16.msra.mxu0 %v1822_v22  ;;  %v1866_v4 = vld [vmem:[#allocation5 + $0x100] sm:$0xff]   ;;  %v1873_v13 = vld [vmem:[#allocation5 + $0x2f8] sm:$0xff]   ;;  %v1877_v17 = vld [vmem:[#allocation5 + $0x2f0] sm:$0xff]  }
  0x32   :  { %1652 = vmatpush3.bf16.msra.mxu1 %v1823_v23  ;;  %1631 = vmatprep.subr.bf16.mxu0 %v1824_v24  ;;  %v1867_v5 = vld [vmem:[#allocation5 + $0x180] sm:$0xff]   ;;  %v1874_v14 = vld [vmem:[#allocation5 + $0x238] sm:$0xff]   ;;  %v1878_v18 = vld [vmem:[#allocation5 + $0x230] sm:$0xff]  }
  0x33   :  { %1653 = vmatprep.subr.bf16.mxu1 %v1825_v25  ;;  %v1875_v15 = vld [vmem:[#allocation5 + $0x2b8] sm:$0xff]   ;;  %v1879_v19 = vld [vmem:[#allocation5 + $0x2b0] sm:$0xff]   ;;  %v1880_v20 = vld [vmem:[#allocation5 + $0x268] sm:$0xff]  }
  0x34   :  { %v1881_v21 = vld [vmem:[#allocation5 + $0x2e8] sm:$0xff]   ;;  %v1884_v24 = vld [vmem:[#allocation5 + $0x260] sm:$0xff]   ;;  %v1892_v32 = vld [vmem:[#allocation5 + $0x250] sm:$0xff]  }
  0x35   :  { %1632 = vmatpush3.bf16.msra.mxu0 %v1826_v26  ;;  %v1882_v22 = vld [vmem:[#allocation5 + $0x228] sm:$0xff]   ;;  %v1885_v25 = vld [vmem:[#allocation5 + $0x2e0] sm:$0xff]   ;;  %v1893_v33 = vld [vmem:[#allocation5 + $0x2d0] sm:$0xff]  }
  0x36   :  { %1654 = vmatpush3.bf16.msra.mxu1 %v1827_v27  ;;  %1633 = vmatprep.subr.bf16.mxu0 %v1828_v28  ;;  %v1883_v23 = vld [vmem:[#allocation5 + $0x2a8] sm:$0xff]   ;;  %v1886_v26 = vld [vmem:[#allocation5 + $0x220] sm:$0xff]   ;;  %v1888_v28 = vld [vmem:[#allocation5 + $0x258] sm:$0xff]  }
  0x37   :  { %1655 = vmatprep.subr.bf16.mxu1 %v1829_v29  ;;  %v1887_v27 = vld [vmem:[#allocation5 + $0x2a0] sm:$0xff]   ;;  %v1889_v29 = vld [vmem:[#allocation5 + $0x2d8] sm:$0xff]   ;;  %v1895_v35 = vld [vmem:[#allocation5 + $0x290] sm:$0xff]  }
  0x38   :  { %v1897_v37 = vld [vmem:[#allocation5 + $0x2c8] sm:$0xff]   ;;  %v1928_v6 = vld [vmem:[#allocation5 + $0x350] sm:$0xff]  }
  0x39   :  { %1634 = vmatpush3.bf16.msra.mxu0 %v1830_v30  ;;  %v1890_v30 = vld [vmem:[#allocation5 + $0x218] sm:$0xff]   ;;  %v1931_v9 = vld [vmem:[#allocation5 + $0x390] sm:$0xff]  }
  0x3a   :  { %1656 = vmatpush3.bf16.msra.mxu1 %v1831_v31  ;;  %1663 = vmatprep.subr.bf16.mxu0 %v1836_v38  ;;  %v1891_v31 = vld [vmem:[#allocation5 + $0x298] sm:$0xff]   ;;  %v1898_v38 = vld [vmem:[#allocation5 + $0x208] sm:$0xff]  }
  0x3b   :  { %1685 = vmatprep.subr.bf16.mxu1 %v1837_v39  ;;  %v1899_v39 = vld [vmem:[#allocation5 + $0x288] sm:$0xff]  }
  0x3c   :  { %1170 = vmatmul.mubr.bf16.vlgmr.msra.gmra.mxu0 %v1475_v34  ;;  %v1894_v34 = vld [vmem:[#allocation5 + $0x210] sm:$0xff]  }
  0x3d   :  { %1210 = vmatmul.mubr.bf16.vlgmr.msra.gmra.mxu1 %v1477_v36  ;;  %1664 = vmatpush3.bf16.msra.mxu0 %v1838_v40  ;;  %v1896_v36 = vld [vmem:[#allocation5 + $0x248] sm:$0xff]   ;;  %v1900_v40 = vld [vmem:[#allocation5 + $0x240] sm:$0xff]  }
  0x3e   :  { %1686 = vmatpush3.bf16.msra.mxu1 %v1839_v41  ;;  %1665 = vmatprep.subr.bf16.mxu0 %v1840_v42  ;;  %v1901_v41 = vld [vmem:[#allocation5 + $0x2c0] sm:$0xff]  }
  0x3f   :  { %1687 = vmatprep.subr.bf16.mxu1 %v1841_v43  ;;  %1249 = vmatprep.mubr.bf16.mxu0 %v1480_v8  ;;  %v1902_v42 = vld [vmem:[#allocation5 + $0x200] sm:$0xff]   ;;  %v1930_v8 = vld [vmem:[#allocation5 + $0x310] sm:$0xff]  }
  0x40   :  { %1289 = vmatprep.mubr.bf16.mxu1 %v1482_v11  ;;  %v1903_v43 = vld [vmem:[#allocation5 + $0x280] sm:$0xff]   ;;  %v1933_v11 = vld [vmem:[#allocation5 + $0x3c8] sm:$0xff]  }
  0x41   :  { %1666 = vmatpush3.bf16.msra.mxu0 %v1842_v44  ;;  %v46_v44 = vld [vmem:[#allocation2 + $0x20] sm:$0xff] }
  0x42   :  { %1688 = vmatpush3.bf16.msra.mxu1 %v1843_v45  ;;  %1667 = vmatprep.subr.bf16.mxu0 %v1844_v46  ;;  %v47_v45 = vld [vmem:[#allocation2 + $0x28] sm:$0xff]  ;;  %v1483_v46 = vcombine.low %v46_v44, %v46_v44 }
  0x43   :  { %1689 = vmatprep.subr.bf16.mxu1 %v1845_v47  ;;  %v1484_v47 = vcombine.high %v46_v44, %v46_v44 }
  0x45   :  { %1668 = vmatpush3.bf16.msra.mxu0 %v1846_v48  ;;  %v1485_v48 = vcombine.low %v47_v45, %v47_v45 }
  0x46   :  { %1690 = vmatpush3.bf16.msra.mxu1 %v1847_v49  ;;  %1669 = vmatprep.subr.bf16.mxu0 %v1848_v50  ;;  %v1486_v49 = vcombine.high %v47_v45, %v47_v45  ;;  %v1908_v50 = vld [vmem:[#allocation5 + $0x378] sm:$0xff]  }
  0x47   :  { %1691 = vmatprep.subr.bf16.mxu1 %v1849_v51  ;;  %v1909_v51 = vld [vmem:[#allocation5 + $0x3f8] sm:$0xff]  }
  0x49   :  { %1670 = vmatpush3.bf16.msra.mxu0 %v1850_v52  ;;  %v1910_v52 = vld [vmem:[#allocation5 + $0x338] sm:$0xff]  }
  0x4a   :  { %1692 = vmatpush3.bf16.msra.mxu1 %v1851_v53  ;;  %1671 = vmatprep.subr.bf16.mxu0 %v1852_v54  ;;  %v1911_v53 = vld [vmem:[#allocation5 + $0x3b8] sm:$0xff]   ;;  %v1912_v54 = vld [vmem:[#allocation5 + $0x370] sm:$0xff]  }
  0x4b   :  { %1693 = vmatprep.subr.bf16.mxu1 %v1853_v55  ;;  %v1913_v55 = vld [vmem:[#allocation5 + $0x3f0] sm:$0xff]  }
  0x4d   :  { %1672 = vmatpush3.bf16.msra.mxu0 %v1854_v56  ;;  %v1914_v56 = vld [vmem:[#allocation5 + $0x330] sm:$0xff]  }
  0x4e   :  { %1694 = vmatpush3.bf16.msra.mxu1 %v1855_v57  ;;  %1673 = vmatprep.subr.bf16.mxu0 %v1856_v58  ;;  %v1915_v57 = vld [vmem:[#allocation5 + $0x3b0] sm:$0xff]   ;;  %v1916_v58 = vld [vmem:[#allocation5 + $0x368] sm:$0xff]  }
  0x4f   :  { %1695 = vmatprep.subr.bf16.mxu1 %v1857_v59  ;;  %v1917_v59 = vld [vmem:[#allocation5 + $0x3e8] sm:$0xff]  }
  0x51   :  { %1674 = vmatpush3.bf16.msra.mxu0 %v1858_v60  ;;  %v1918_v60 = vld [vmem:[#allocation5 + $0x328] sm:$0xff]  }
  0x52   :  { %1696 = vmatpush3.bf16.msra.mxu1 %v1859_v61  ;;  %1675 = vmatprep.subr.bf16.mxu0 %v1860_v62  ;;  %v1919_v61 = vld [vmem:[#allocation5 + $0x3a8] sm:$0xff]   ;;  %v1920_v62 = vld [vmem:[#allocation5 + $0x360] sm:$0xff]  }
  0x53   :  { %1697 = vmatprep.subr.bf16.mxu1 %v1861_v63  ;;  %v1921_v63 = vld [vmem:[#allocation5 + $0x3e0] sm:$0xff]  }
  0x55   :  { %1676 = vmatpush3.bf16.msra.mxu0 %v1862_v0  ;;  %v1922_v0 = vld [vmem:[#allocation5 + $0x320] sm:$0xff]  }
  0x56   :  { %1698 = vmatpush3.bf16.msra.mxu1 %v1863_v1  ;;  %1677 = vmatprep.subr.bf16.mxu0 %v1864_v2  ;;  %v1923_v1 = vld [vmem:[#allocation5 + $0x3a0] sm:$0xff]   ;;  %v1924_v2 = vld [vmem:[#allocation5 + $0x358] sm:$0xff]  }
  0x57   :  { %1699 = vmatprep.subr.bf16.mxu1 %v1865_v3  ;;  %v1925_v3 = vld [vmem:[#allocation5 + $0x3d8] sm:$0xff]  }
  0x59   :  { %1678 = vmatpush3.bf16.msra.mxu0 %v1866_v4  ;;  %v1926_v4 = vld [vmem:[#allocation5 + $0x318] sm:$0xff]  }
  0x5a   :  { %1700 = vmatpush3.bf16.msra.mxu1 %v1867_v5  ;;  %1707 = vmatprep.subr.bf16.mxu0 %v1872_v12  ;;  %v1927_v5 = vld [vmem:[#allocation5 + $0x398] sm:$0xff]   ;;  %v1934_v12 = vld [vmem:[#allocation5 + $0x308] sm:$0xff]  }
  0x5b   :  { %1729 = vmatprep.subr.bf16.mxu1 %v1873_v13  ;;  %v1935_v13 = vld [vmem:[#allocation5 + $0x388] sm:$0xff]  }
  0x5c   :  { %1250 = vmatmul.mubr.bf16.vlgmr.msra.gmra.mxu0 %v1479_v7  ;;  %v1929_v7 = vld [vmem:[#allocation5 + $0x3d0] sm:$0xff]  }
  0x5d   :  { %1290 = vmatmul.mubr.bf16.vlgmr.msra.gmra.mxu1 %v1481_v10  ;;  %1708 = vmatpush3.bf16.msra.mxu0 %v1874_v14  ;;  %v1932_v10 = vld [vmem:[#allocation5 + $0x348] sm:$0xff]   ;;  %v1936_v14 = vld [vmem:[#allocation5 + $0x340] sm:$0xff]  }
  0x5e   :  { %1730 = vmatpush3.bf16.msra.mxu1 %v1875_v15  ;;  %1709 = vmatprep.subr.bf16.mxu0 %v1876_v16  ;;  %v1937_v15 = vld [vmem:[#allocation5 + $0x3c0] sm:$0xff]  }
  0x5f   :  { %1731 = vmatprep.subr.bf16.mxu1 %v1877_v17  ;;  %1329 = vmatprep.mubr.bf16.mxu0 %v1484_v47  ;;  %v1938_v16 = vld [vmem:[#allocation5 + $0x300] sm:$0xff]  }
  0x60   :  { %1369 = vmatprep.mubr.bf16.mxu1 %v1486_v49  ;;  %v1939_v17 = vld [vmem:[#allocation5 + $0x380] sm:$0xff]  }
  0x61   :  { %1710 = vmatpush3.bf16.msra.mxu0 %v1878_v18  ;;  %v48_v18 = vld [vmem:[#allocation2 + $0x30] sm:$0xff] }
  0x62   :  { %1732 = vmatpush3.bf16.msra.mxu1 %v1879_v19  ;;  %1711 = vmatprep.subr.bf16.mxu0 %v1880_v20  ;;  %v49_v19 = vld [vmem:[#allocation2 + $0x38] sm:$0xff]  ;;  %v1487_v20 = vcombine.low %v48_v18, %v48_v18 }
  0x63   :  { %1733 = vmatprep.subr.bf16.mxu1 %v1881_v21  ;;  %v1488_v21 = vcombine.high %v48_v18, %v48_v18 }
  0x65   :  { %1712 = vmatpush3.bf16.msra.mxu0 %v1882_v22  ;;  %v1489_v22 = vcombine.low %v49_v19, %v49_v19 }
  0x66   :  { %1734 = vmatpush3.bf16.msra.mxu1 %v1883_v23  ;;  %1713 = vmatprep.subr.bf16.mxu0 %v1884_v24  ;;  %v1490_v23 = vcombine.high %v49_v19, %v49_v19 }
  0x67   :  { %1735 = vmatprep.subr.bf16.mxu1 %v1885_v25 }
  0x69   :  { %1714 = vmatpush3.bf16.msra.mxu0 %v1886_v26  ;;  %v1474_v26 = vld [vmem:[%s2049_s2] ss:$0 sm:$0xff]  ;;  %s2014_s2 = smov [#allocation7]  }
  0x6a   :  { %1736 = vmatpush3.bf16.msra.mxu1 %v1887_v27  ;;  %1715 = vmatprep.subr.bf16.mxu0 %v1888_v28  ;;  %s1464_s24 = sshll.u32 %s2014_s2, 4  ;;  %s1465_s24 = int_to_ptr.vmem [resolvable:$true] %s1464_s24 }
  0x6b   :  { %1737 = vmatprep.subr.bf16.mxu1 %v1889_v29  ;;  %s1984_s25 = scalar_lea.vmem %s1465_s24, 128  ;;  %p1989_p11 = scmp.lt.s32.totalorder %s1465_s24, %s1465_s24 }
  0x6c   :  { %p1985_p10 = scmp.ne.s32.totalorder %s1465_s24, %s1984_s25  ;;  %p1990_p12 = scmp.lt.s32.totalorder %s1984_s25, %s1984_s25 }
  0x6d   :  { %1716 = vmatpush3.bf16.msra.mxu0 %v1890_v30 }
  0x6e   :  { %1738 = vmatpush3.bf16.msra.mxu1 %v1891_v31  ;;  %1717 = vmatprep.subr.bf16.mxu0 %v1892_v32  ;;  %p1991_p13 = por %p1990_p12, %p1989_p11 }
  0x6f   :  { %1739 = vmatprep.subr.bf16.mxu1 %v1893_v33 }
  0x70   :  { %p1992_p0 = pnand %p1991_p13, %p1985_p10 }
  0x71   :  { %1718 = vmatpush3.bf16.msra.mxu0 %v1894_v34 }
  0x72   :  { %1740 = vmatpush3.bf16.msra.mxu1 %v1895_v35  ;;  %1719 = vmatprep.subr.bf16.mxu0 %v1896_v36 }
  0x73   :  { %1741 = vmatprep.subr.bf16.mxu1 %v1897_v37 }
  0x75   :  { %1720 = vmatpush3.bf16.msra.mxu0 %v1898_v38 }
  0x76   :  { %1742 = vmatpush3.bf16.msra.mxu1 %v1899_v39  ;;  %1721 = vmatprep.subr.bf16.mxu0 %v1900_v40 }
  0x77   :  { %1743 = vmatprep.subr.bf16.mxu1 %v1901_v41 }
  0x79   :  { %1722 = vmatpush3.bf16.msra.mxu0 %v1902_v42 }
  0x7a   :  { %1744 = vmatpush3.bf16.msra.mxu1 %v1903_v43  ;;  %1751 = vmatprep.subr.bf16.mxu0 %v1908_v50 }
  0x7b   :  { %1773 = vmatprep.subr.bf16.mxu1 %v1909_v51 }
  0x7c   :  { %1330 = vmatmul.mubr.bf16.vlgmr.msra.gmra.mxu0 %v1483_v46 }
  0x7d   :  { %1370 = vmatmul.mubr.bf16.vlgmr.msra.gmra.mxu1 %v1485_v48  ;;  %1752 = vmatpush3.bf16.msra.mxu0 %v1910_v52 }
  0x7e   :  { %1774 = vmatpush3.bf16.msra.mxu1 %v1911_v53  ;;  %1753 = vmatprep.subr.bf16.mxu0 %v1912_v54 }
  0x7f   :  { %1775 = vmatprep.subr.bf16.mxu1 %v1913_v55  ;;  %1409 = vmatprep.mubr.bf16.mxu0 %v1488_v21 }
  0x80   :  { %1449 = vmatprep.mubr.bf16.mxu1 %v1490_v23 }
  0x81   :  { %1754 = vmatpush3.bf16.msra.mxu0 %v1914_v56 }
  0x82   :  { %1776 = vmatpush3.bf16.msra.mxu1 %v1915_v57  ;;  %1755 = vmatprep.subr.bf16.mxu0 %v1916_v58 }
  0x83   :  { %1777 = vmatprep.subr.bf16.mxu1 %v1917_v59 }
  0x85   :  { %1756 = vmatpush3.bf16.msra.mxu0 %v1918_v60 }
  0x86   :  { %1778 = vmatpush3.bf16.msra.mxu1 %v1919_v61  ;;  %1757 = vmatprep.subr.bf16.mxu0 %v1920_v62 }
  0x87   :  { %1779 = vmatprep.subr.bf16.mxu1 %v1921_v63 }
  0x89   :  { %1758 = vmatpush3.bf16.msra.mxu0 %v1922_v0 }
  0x8a   :  { %1780 = vmatpush3.bf16.msra.mxu1 %v1923_v1  ;;  %1759 = vmatprep.subr.bf16.mxu0 %v1924_v2 }
  0x8b   :  { %1781 = vmatprep.subr.bf16.mxu1 %v1925_v3 }
  0x8d   :  { %1760 = vmatpush3.bf16.msra.mxu0 %v1926_v4 }
  0x8e   :  { %1782 = vmatpush3.bf16.msra.mxu1 %v1927_v5  ;;  %1761 = vmatprep.subr.bf16.mxu0 %v1928_v6 }
  0x8f   :  { %1783 = vmatprep.subr.bf16.mxu1 %v1929_v7 }
  0x91   :  { %1762 = vmatpush3.bf16.msra.mxu0 %v1930_v8 }
  0x92   :  { %1784 = vmatpush3.bf16.msra.mxu1 %v1931_v9  ;;  %1763 = vmatprep.subr.bf16.mxu0 %v1932_v10 }
  0x93   :  { %1785 = vmatprep.subr.bf16.mxu1 %v1933_v11 }
  0x95   :  { %1764 = vmatpush3.bf16.msra.mxu0 %v1934_v12 }
  0x96   :  { %1786 = vmatpush3.bf16.msra.mxu1 %v1935_v13  ;;  %1765 = vmatprep.subr.bf16.mxu0 %v1936_v14 }
  0x97   :  { %1787 = vmatprep.subr.bf16.mxu1 %v1937_v15 }
  0x99   :  { %1766 = vmatpush3.bf16.msra.mxu0 %v1938_v16 }
  0x9a   :  { %1788 = vmatpush3.bf16.msra.mxu1 %v1939_v17 }
  0x9c   :  { %1410 = vmatmul.mubr.bf16.vlgmr.msra.gmra.mxu0 %v1487_v20 }
  0x9d   :  { %1450 = vmatmul.mubr.bf16.vlgmr.msra.gmra.mxu1 %v1489_v22 }
  0xfc   :  { %v1635_v24 = vpop.f32.mrf.mxu0 }
  0xfd   :  { %v1657_v25 = vpop.f32.mrf.mxu1 }
  0xfe   :  { %v1636_v27 = vpop.f32.mrf.mxu0 }
  0xff   :  { %v1658_v28 = vpop.f32.mrf.mxu1  ;;  %v1637_v29 = vadd.f32 %v1636_v27, %v1635_v24 }
 0x100   :  { %v1659_v30 = vadd.f32 %v1658_v28, %v1657_v25  ;;  %v1638_v31 = vpop.f32.mrf.mxu0 }
 0x101   :  { %v1660_v32 = vpop.f32.mrf.mxu1  ;;  %v1172_v33 = vadd.f32 %v1637_v29, %v1474_v26 }
 0x102   :  { %v1639_v34 = vpop.f32.mrf.mxu0 }
 0x103   :  { %v1661_v35 = vpop.f32.mrf.mxu1  ;;  %v1212_v36 = vadd.f32 %v1659_v30, %v1172_v33 }
 0x11c   :  { %v1679_v37 = vpop.f32.mrf.mxu0 }
 0x11d   :  { %v1701_v38 = vpop.f32.mrf.mxu1 }
 0x11e   :  { %v1680_v39 = vpop.f32.mrf.mxu0 }
 0x11f   :  { %v1702_v40 = vpop.f32.mrf.mxu1  ;;  %v1681_v53 = vadd.f32 %v1680_v39, %v1679_v37 }
 0x120   :  { %v1682_v41 = vpop.f32.mrf.mxu0  ;;  %v1703_v55 = vadd.f32 %v1702_v40, %v1701_v38 }
 0x121   :  { %v1704_v42 = vpop.f32.mrf.mxu1  ;;  %v1252_v54 = vadd.f32 %v1681_v53, %v1212_v36 }
 0x122   :  { %v1683_v43 = vpop.f32.mrf.mxu0 }
 0x123   :  { %v1705_v44 = vpop.f32.mrf.mxu1  ;;  %v1292_v57 = vadd.f32 %v1703_v55, %v1252_v54 }
 0x13c   :  { %v1723_v45 = vpop.f32.mrf.mxu0 }
 0x13d   :  { %v1745_v46 = vpop.f32.mrf.mxu1 }
 0x13e   :  { %v1724_v47 = vpop.f32.mrf.mxu0 }
 0x13f   :  { %v1746_v48 = vpop.f32.mrf.mxu1  ;;  %v1725_v56 = vadd.f32 %v1724_v47, %v1723_v45 }
 0x140   :  { %v1726_v49 = vpop.f32.mrf.mxu0  ;;  %v1747_v59 = vadd.f32 %v1746_v48, %v1745_v46 }
 0x141   :  { %v1748_v50 = vpop.f32.mrf.mxu1  ;;  %v1332_v58 = vadd.f32 %v1725_v56, %v1292_v57 }
 0x142   :  { %v1727_v51 = vpop.f32.mrf.mxu0 }
 0x143   :  { %v1749_v52 = vpop.f32.mrf.mxu1  ;;  %v1372_v63 = vadd.f32 %v1747_v59, %v1332_v58 }
 0x15c   :  { %v1767_v60 = vpop.f32.mrf.mxu0 }
 0x15d   :  { %v1789_v61 = vpop.f32.mrf.mxu1 }
 0x15e   :  { %v1768_v62 = vpop.f32.mrf.mxu0 }
 0x15f   :  { %v1769_v0 = vadd.f32 %v1768_v62, %v1767_v60  ;;  %v1790_v1 = vpop.f32.mrf.mxu1 }
 0x160   :  { %v1770_v2 = vpop.f32.mrf.mxu0  ;;  %v1791_v4 = vadd.f32 %v1790_v1, %v1789_v61 }
 0x161   :  { %v1412_v3 = vadd.f32 %v1769_v0, %v1372_v63  ;;  %v1792_v5 = vpop.f32.mrf.mxu1 }
 0x162   :  { %v1771_v6 = vpop.f32.mrf.mxu0 }
 0x163   :  { %v1452_v7 = vadd.f32 %v1791_v4, %v1412_v3  ;;  %v1793_v8 = vpop.f32.mrf.mxu1 }
 0x165   :  { %1457 = vst [vmem:[#allocation7] sm:$0xff] %v1452_v7 }
 0x166   :  { %1995 = shalt.err (!%p1992_p0)
}
 0x167   :  { %1467 = dma.vmem_to_hbm [thread:$0]  %s1465_s24, 128, %s2050_s3, [#allocation4]  }
 0x168   :  { %2008 = dma.done.wait [#allocation4], 128  }
 0x169   :  { %2009 = vsyncadd [#allocation4], 4294967168 }
 0x16a   :  { %1471 = vsyncpa [#allocation3], 1 }
 0x16b   :  { %1472 = vsyncpa [#allocation6], 1 }
 0x16c   :  { %1473 = vsyncpa [#allocation4], 1 }

</bundles_post_ra>
